<compile_context>
chip_gen: v6e
topology: v6e:2x2x1
jax: 0.10.0
libtpu: 0.0.40
codegen_flags: <defaults>
</compile_context>

<pallas_src>
import functools

import jax
import jax.numpy as jnp
from jax.experimental import pallas as pl
from jax.experimental.pallas import tpu as pltpu


# Polyphase mapping for a 4x4 / stride-2 / pad-1 conv along one axis:
#   input index 2*o + k - 1 == 2*q + phase(k);  inside the zero-padded (O+2) plane
#   the static slice start for tap k is _START[k].
_PHASE = (1, 0, 1, 0)
_START = (0, 1, 1, 2)


def _down_block_kernel(xp_ref, wt_ref, scale_ref, bias_ref, o_ref, *,
                       oh, tow, kpack, apply_act, negative_slope):
    """One (batch, W-tile, Cout-tile) output block per grid step.

    xp_ref   : (1, 2, OH+2, TOW, 4*Cin)  kj-packed, zero-padded bf16 activations
    wt_ref   : (4, 4*Cin, TCO)           kj-packed conv weight (ki major), bf16
    scale_ref: (1, TCO)                  folded BN scale, f32
    bias_ref : (1, TCO)                  folded BN shift + conv bias, f32
    o_ref    : (1, OH, TOW, TCO)         output block
    """
    tco = o_ref.shape[-1]
    acc = jnp.zeros((oh * tow, tco), jnp.float32)
    for ki in range(4):
        ph, sh = _PHASE[ki], _START[ki]
        # Static Ref slice along *leading* (row) axes only -> contiguous load, no
        # sublane relayout (the kj/W shift was hoisted into the wrapper layout).
        slab = xp_ref[0, ph, sh:sh + oh, :, :]            # (OH, TOW, 4*Cin) bf16
        if apply_act:
            # LeakyReLU(0.2); leaky(0) == 0 so the zero padding is preserved.
            slab = jnp.where(slab > 0, slab, slab * negative_slope)
        # Dropout2d: inference-mode identity (see TODO at top).
        # Layout-preserving reshape when TOW % 8 == 0; bf16 MXU matmul, K = 4*Cin,
        # accumulated in f32.
        acc = acc + jnp.dot(slab.reshape(oh * tow, kpack), wt_ref[ki],
                            preferred_element_type=jnp.float32)
    # Folded conv-bias + BatchNorm (inference) as a per-output-channel f32 affine.
    out = acc * scale_ref[...] + bias_ref[...]
    o_ref[0] = out.reshape(oh, tow, tco).astype(o_ref.dtype)


def _pick_cout_tile(cout):
    """Full Cout when it already fits the MXU nicely; otherwise a 256/128 divisor."""
    if cout <= 256:
        return cout
    for t in (256, 128):
        if cout % t == 0:
            return t
    return cout


def _pick_w_tile(ow, oh, kpack, tco, out_itemsize, budget_bytes=12 << 20):
    """Largest power-of-two-divisor tile of OW (kept a multiple of 8) whose per-step
    working set (bf16 input block + f32 accumulator + output block) fits the budget.
    If OW is not a multiple of 8 (tiny innermost layers) we keep the full OW: still
    correct, just lane/sublane-sparse (irrelevant at those sizes)."""
    tow = ow

    def working_set(t):
        return (2 * (oh + 2) * t * kpack * 2          # bf16 input block
                + oh * t * tco * 4                     # f32 accumulator
                + oh * t * tco * out_itemsize)         # output block

    while tow % 16 == 0 and working_set(tow) > budget_bytes:
        tow //= 2
    return tow


def unet_down_block(x, conv_w, conv_b, bn_gamma, bn_beta, bn_mean, bn_var, *,
                    eps=1e-5, negative_slope=0.2, outermost=False, innermost=False):
    """Forward pass of UNetDownBlock (default strideconv config), NCHW in/out."""
    B, Cin, H, W = x.shape
    Cout, Cin_w, KH, KW = conv_w.shape
    assert Cin_w == Cin and KH == 4 and KW == 4, "strideconv path expects a 4x4 kernel"
    assert H % 2 == 0 and W % 2 == 0
    OH, OW = H // 2, W // 2
    KP = 4 * Cin                                       # kj-packed contraction size

    # ---- wrapper-side layout plumbing only (no compute hoisted out of the kernel) ----
    # NCHW -> polyphase NHWC planes (B, ph, pw, OH, OW, Cin), zero-padded by 1.
    xh = x.transpose(0, 2, 3, 1).reshape(B, OH, 2, OW, 2, Cin)
    xh = xh.transpose(0, 2, 4, 1, 3, 5)                # (B, ph, pw, OH, OW, Cin)
    xh = jnp.pad(xh, ((0, 0), (0, 0), (0, 0), (1, 1), (1, 1), (0, 0)))
    # Hoist the kj (W-axis) tap shift and pack the 4 kj taps onto the channel axis.
    # Result: (B, 2, OH+2, OW, 4*Cin) bf16 (MXU-native), ~2x raw input footprint.
    taps = [xh[:, :, _PHASE[kj], :, _START[kj]:_START[kj] + OW, :] for kj in range(4)]
    xpk = jnp.concatenate(taps, axis=-1).astype(jnp.bfloat16)

    # Conv weight -> (ki, kj*Cin, Cout) bf16, matching the kj-packed channel order.
    wt = conv_w.transpose(2, 3, 1, 0).reshape(4, KP, Cout).astype(jnp.bfloat16)

    # Fold BatchNorm (inference) + conv bias into a single per-channel f32 affine.
    if innermost:                                      # innermost: no norm layer
        scale = jnp.ones((Cout,), jnp.float32)
        shift = jnp.zeros((Cout,), jnp.float32)
    else:
        inv = (bn_gamma / jnp.sqrt(bn_var + eps)).astype(jnp.float32)
        scale = inv
        shift = bn_beta.astype(jnp.float32) - bn_mean.astype(jnp.float32) * inv
    bias_eff = (scale * conv_b.astype(jnp.float32) + shift).reshape(1, Cout)
    scale = scale.reshape(1, Cout)

    # ---- tile sizes + tile-derived VMEM budget ---------------------------------------
    out_itemsize = jnp.dtype(x.dtype).itemsize
    TCO = _pick_cout_tile(Cout)
    TOW = _pick_w_tile(OW, OH, KP, TCO, out_itemsize)

    in_blk = 2 * (OH + 2) * TOW * KP * 2               # bf16 input block
    w_blk = 4 * KP * TCO * 2                           # bf16 weight block
    aff_blk = 2 * TCO * 4                              # scale + bias
    out_blk = OH * TOW * TCO * out_itemsize
    acc_blk = OH * TOW * TCO * 4
    vmem_bytes = 2 * (in_blk + w_blk + aff_blk + out_blk) + acc_blk + (2 << 20)
    vmem_bytes = int(min(max(vmem_bytes, 24 << 20), 56 << 20))  # cap < v7x 64 MiB/TC

    kernel = functools.partial(
        _down_block_kernel, oh=OH, tow=TOW, kpack=KP,
        apply_act=not outermost, negative_slope=negative_slope)

    out = pl.pallas_call(
        kernel,
        out_shape=jax.ShapeDtypeStruct((B, OH, OW, Cout), x.dtype),
        grid_spec=pltpu.PrefetchScalarGridSpec(
            num_scalar_prefetch=0,
            # Cout tiles innermost so the (larger) input block is reused across them.
            grid=(B, OW // TOW, Cout // TCO),
            in_specs=[
                pl.BlockSpec((1, 2, OH + 2, TOW, KP), lambda b, w, c: (b, 0, 0, w, 0)),
                pl.BlockSpec((4, KP, TCO), lambda b, w, c: (0, 0, c)),
                pl.BlockSpec((1, TCO), lambda b, w, c: (0, c)),
                pl.BlockSpec((1, TCO), lambda b, w, c: (0, c)),
            ],
            out_specs=pl.BlockSpec((1, OH, TOW, TCO), lambda b, w, c: (b, 0, w, c)),
        ),
        compiler_params=pltpu.CompilerParams(
            # All axes independent -> megacore can shard any of them (v7x 2 TCs,
            # useful even when B == 1 thanks to the spatial/Cout axes).
            dimension_semantics=("parallel", "parallel", "parallel"),
            vmem_limit_bytes=vmem_bytes,
        ),
    )(xpk, wt, scale, bias_eff)

    # Back to the PyTorch module's NCHW output convention.
    return out.transpose(0, 3, 1, 2)


def _reference(x, conv_w, conv_b, bn_gamma, bn_beta, bn_mean, bn_var, *,
               eps=1e-5, negative_slope=0.2, outermost=False, innermost=False):
    """Pure-JAX f32 mirror of the PyTorch forward (eval mode)."""
    y = x
    if not outermost:
        y = jnp.where(y > 0, y, negative_slope * y)    # LeakyReLU(0.2); dropout = identity
    y = jax.lax.conv_general_dilated(
        y, conv_w, window_strides=(2, 2), padding=[(1, 1), (1, 1)],
        dimension_numbers=("NCHW", "OIHW", "NCHW"))
    y = y + conv_b[None, :, None, None]
    if not innermost:
        y = (y - bn_mean[None, :, None, None]) / jnp.sqrt(bn_var[None, :, None, None] + eps)
        y = y * bn_gamma[None, :, None, None] + bn_beta[None, :, None, None]
    return y


if __name__ == "__main__":
    B, Cin, Cout, H, W = 2, 4, 8, 16, 16

    key = jax.random.PRNGKey(0)
    ks = jax.random.split(key, 7)
    x = jax.random.normal(ks[0], (B, Cin, H, W), jnp.float32)
    conv_w = jax.random.normal(ks[1], (Cout, Cin, 4, 4), jnp.float32) * 0.2
    conv_b = jax.random.normal(ks[2], (Cout,), jnp.float32) * 0.1
    bn_gamma = 1.0 + 0.1 * jax.random.normal(ks[3], (Cout,), jnp.float32)
    bn_beta = 0.1 * jax.random.normal(ks[4], (Cout,), jnp.float32)
    bn_mean = 0.1 * jax.random.normal(ks[5], (Cout,), jnp.float32)
    bn_var = jax.random.uniform(ks[6], (Cout,), jnp.float32, 0.5, 1.5)

    out = unet_down_block(x, conv_w, conv_b, bn_gamma, bn_beta, bn_mean, bn_var)
    out = jax.block_until_ready(out)

    ref = _reference(x, conv_w, conv_b, bn_gamma, bn_beta, bn_mean, bn_var)
    err = float(jnp.max(jnp.abs(out - ref)))
    # bf16 matmul operands (f32 accumulation) vs. pure-f32 reference -> loosened tolerance.
    assert jnp.allclose(out, ref, atol=1e-1, rtol=5e-2), f"max abs err = {err}"
    print("KERNEL_OK")
</pallas_src>

<mosaic_0001>
module attributes {stable_mosaic.version = 11 : i64} {
  func.func @_down_block_kernel(%arg0: i32, %arg1: i32, %arg2: i32, %arg3: memref<1x2x10x8x16xbf16, #tpu.memory_space<vmem>>, %arg4: memref<4x16x8xbf16, #tpu.memory_space<vmem>>, %arg5: memref<1x8xf32, #tpu.memory_space<vmem>>, %arg6: memref<1x8xf32, #tpu.memory_space<vmem>>, %arg7: memref<1x8x8x8xf32, #tpu.memory_space<vmem>>) attributes {dimension_semantics = [#tpu.dimension_semantics<parallel>, #tpu.dimension_semantics<parallel>, #tpu.dimension_semantics<parallel>], iteration_bounds = array<i64: 2, 1, 1>, scalar_prefetch = 0 : i64, scratch_operands = 0 : i64, tpu.core_type = #tpu.core_type<tc>, window_params = [{transform_indices = @transform_0, window_bounds = array<i64: 1, 2, 10, 8, 16>}, {transform_indices = @transform_1, window_bounds = array<i64: 4, 16, 8>}, {transform_indices = @transform_2, window_bounds = array<i64: 1, 8>}, {transform_indices = @transform_3, window_bounds = array<i64: 1, 8>}, {transform_indices = @transform_4, window_bounds = array<i64: 1, 8, 8, 8>}]} {
    %cst = arith.constant 0.000000e+00 : f32
    %0 = vector.broadcast %cst : f32 to vector<64x8xf32>
    %c0 = arith.constant 0 : index
    %c1 = arith.constant 1 : index
    %c0_0 = arith.constant 0 : index
    %c0_1 = arith.constant 0 : index
    %c0_2 = arith.constant 0 : index
    %1 = vector.load %arg3[%c0, %c1, %c0_0, %c0_1, %c0_2] : memref<1x2x10x8x16xbf16, #tpu.memory_space<vmem>>, vector<1x1x8x8x16xbf16>
    %2 = vector.shape_cast %1 : vector<1x1x8x8x16xbf16> to vector<8x8x16xbf16>
    %cst_3 = arith.constant 0.000000e+00 : bf16
    %3 = vector.broadcast %cst_3 : bf16 to vector<8x8x16xbf16>
    %4 = arith.cmpf ogt, %2, %3 : vector<8x8x16xbf16>
    %cst_4 = arith.constant 2.001950e-01 : bf16
    %5 = vector.broadcast %cst_4 : bf16 to vector<8x8x16xbf16>
    %6 = arith.mulf %2, %5 : vector<8x8x16xbf16>
    %7 = arith.select %4, %2, %6 : vector<8x8x16xi1>, vector<8x8x16xbf16>
    %8 = vector.shape_cast %7 : vector<8x8x16xbf16> to vector<64x16xbf16>
    %c0_5 = arith.constant 0 : index
    %c0_6 = arith.constant 0 : index
    %c0_7 = arith.constant 0 : index
    %9 = vector.load %arg4[%c0_5, %c0_6, %c0_7] : memref<4x16x8xbf16, #tpu.memory_space<vmem>>, vector<1x16x8xbf16>
    %10 = vector.shape_cast %9 : vector<1x16x8xbf16> to vector<16x8xbf16>
    %cst_8 = arith.constant dense<0.000000e+00> : vector<64x8xf32>
    %11 = tpu.matmul %8, %10, %cst_8 {dimension_numbers = #tpu.dot_dimension_numbers<[1], [0], [0], [1], [0, 0, 1, 1], [], []>} : vector<64x16xbf16>, vector<16x8xbf16>, vector<64x8xf32> -> vector<64x8xf32>
    %12 = arith.addf %0, %11 : vector<64x8xf32>
    %c0_9 = arith.constant 0 : index
    %c0_10 = arith.constant 0 : index
    %c1_11 = arith.constant 1 : index
    %c0_12 = arith.constant 0 : index
    %c0_13 = arith.constant 0 : index
    %13 = vector.load %arg3[%c0_9, %c0_10, %c1_11, %c0_12, %c0_13] : memref<1x2x10x8x16xbf16, #tpu.memory_space<vmem>>, vector<1x1x8x8x16xbf16>
    %14 = vector.shape_cast %13 : vector<1x1x8x8x16xbf16> to vector<8x8x16xbf16>
    %cst_14 = arith.constant 0.000000e+00 : bf16
    %15 = vector.broadcast %cst_14 : bf16 to vector<8x8x16xbf16>
    %16 = arith.cmpf ogt, %14, %15 : vector<8x8x16xbf16>
    %cst_15 = arith.constant 2.001950e-01 : bf16
    %17 = vector.broadcast %cst_15 : bf16 to vector<8x8x16xbf16>
    %18 = arith.mulf %14, %17 : vector<8x8x16xbf16>
    %19 = arith.select %16, %14, %18 : vector<8x8x16xi1>, vector<8x8x16xbf16>
    %20 = vector.shape_cast %19 : vector<8x8x16xbf16> to vector<64x16xbf16>
    %c1_16 = arith.constant 1 : index
    %c0_17 = arith.constant 0 : index
    %c0_18 = arith.constant 0 : index
    %21 = vector.load %arg4[%c1_16, %c0_17, %c0_18] : memref<4x16x8xbf16, #tpu.memory_space<vmem>>, vector<1x16x8xbf16>
    %22 = vector.shape_cast %21 : vector<1x16x8xbf16> to vector<16x8xbf16>
    %cst_19 = arith.constant dense<0.000000e+00> : vector<64x8xf32>
    %23 = tpu.matmul %20, %22, %cst_19 {dimension_numbers = #tpu.dot_dimension_numbers<[1], [0], [0], [1], [0, 0, 1, 1], [], []>} : vector<64x16xbf16>, vector<16x8xbf16>, vector<64x8xf32> -> vector<64x8xf32>
    %24 = arith.addf %12, %23 : vector<64x8xf32>
    %c0_20 = arith.constant 0 : index
    %c1_21 = arith.constant 1 : index
    %c1_22 = arith.constant 1 : index
    %c0_23 = arith.constant 0 : index
    %c0_24 = arith.constant 0 : index
    %25 = vector.load %arg3[%c0_20, %c1_21, %c1_22, %c0_23, %c0_24] : memref<1x2x10x8x16xbf16, #tpu.memory_space<vmem>>, vector<1x1x8x8x16xbf16>
    %26 = vector.shape_cast %25 : vector<1x1x8x8x16xbf16> to vector<8x8x16xbf16>
    %cst_25 = arith.constant 0.000000e+00 : bf16
    %27 = vector.broadcast %cst_25 : bf16 to vector<8x8x16xbf16>
    %28 = arith.cmpf ogt, %26, %27 : vector<8x8x16xbf16>
    %cst_26 = arith.constant 2.001950e-01 : bf16
    %29 = vector.broadcast %cst_26 : bf16 to vector<8x8x16xbf16>
    %30 = arith.mulf %26, %29 : vector<8x8x16xbf16>
    %31 = arith.select %28, %26, %30 : vector<8x8x16xi1>, vector<8x8x16xbf16>
    %32 = vector.shape_cast %31 : vector<8x8x16xbf16> to vector<64x16xbf16>
    %c2 = arith.constant 2 : index
    %c0_27 = arith.constant 0 : index
    %c0_28 = arith.constant 0 : index
    %33 = vector.load %arg4[%c2, %c0_27, %c0_28] : memref<4x16x8xbf16, #tpu.memory_space<vmem>>, vector<1x16x8xbf16>
    %34 = vector.shape_cast %33 : vector<1x16x8xbf16> to vector<16x8xbf16>
    %cst_29 = arith.constant dense<0.000000e+00> : vector<64x8xf32>
    %35 = tpu.matmul %32, %34, %cst_29 {dimension_numbers = #tpu.dot_dimension_numbers<[1], [0], [0], [1], [0, 0, 1, 1], [], []>} : vector<64x16xbf16>, vector<16x8xbf16>, vector<64x8xf32> -> vector<64x8xf32>
    %36 = arith.addf %24, %35 : vector<64x8xf32>
    %c0_30 = arith.constant 0 : index
    %c0_31 = arith.constant 0 : index
    %c2_32 = arith.constant 2 : index
    %c0_33 = arith.constant 0 : index
    %c0_34 = arith.constant 0 : index
    %37 = vector.load %arg3[%c0_30, %c0_31, %c2_32, %c0_33, %c0_34] : memref<1x2x10x8x16xbf16, #tpu.memory_space<vmem>>, vector<1x1x8x8x16xbf16>
    %38 = vector.shape_cast %37 : vector<1x1x8x8x16xbf16> to vector<8x8x16xbf16>
    %cst_35 = arith.constant 0.000000e+00 : bf16
    %39 = vector.broadcast %cst_35 : bf16 to vector<8x8x16xbf16>
    %40 = arith.cmpf ogt, %38, %39 : vector<8x8x16xbf16>
    %cst_36 = arith.constant 2.001950e-01 : bf16
    %41 = vector.broadcast %cst_36 : bf16 to vector<8x8x16xbf16>
    %42 = arith.mulf %38, %41 : vector<8x8x16xbf16>
    %43 = arith.select %40, %38, %42 : vector<8x8x16xi1>, vector<8x8x16xbf16>
    %44 = vector.shape_cast %43 : vector<8x8x16xbf16> to vector<64x16xbf16>
    %c3 = arith.constant 3 : index
    %c0_37 = arith.constant 0 : index
    %c0_38 = arith.constant 0 : index
    %45 = vector.load %arg4[%c3, %c0_37, %c0_38] : memref<4x16x8xbf16, #tpu.memory_space<vmem>>, vector<1x16x8xbf16>
    %46 = vector.shape_cast %45 : vector<1x16x8xbf16> to vector<16x8xbf16>
    %cst_39 = arith.constant dense<0.000000e+00> : vector<64x8xf32>
    %47 = tpu.matmul %44, %46, %cst_39 {dimension_numbers = #tpu.dot_dimension_numbers<[1], [0], [0], [1], [0, 0, 1, 1], [], []>} : vector<64x16xbf16>, vector<16x8xbf16>, vector<64x8xf32> -> vector<64x8xf32>
    %48 = arith.addf %36, %47 : vector<64x8xf32>
    %c0_40 = arith.constant 0 : index
    %c0_41 = arith.constant 0 : index
    %49 = vector.load %arg5[%c0_40, %c0_41] : memref<1x8xf32, #tpu.memory_space<vmem>>, vector<1x8xf32>
    %50 = vector.broadcast %49 : vector<1x8xf32> to vector<64x8xf32>
    %51 = arith.mulf %48, %50 : vector<64x8xf32>
    %c0_42 = arith.constant 0 : index
    %c0_43 = arith.constant 0 : index
    %52 = vector.load %arg6[%c0_42, %c0_43] : memref<1x8xf32, #tpu.memory_space<vmem>>, vector<1x8xf32>
    %53 = vector.broadcast %52 : vector<1x8xf32> to vector<64x8xf32>
    %54 = arith.addf %51, %53 : vector<64x8xf32>
    %55 = vector.shape_cast %54 : vector<64x8xf32> to vector<8x8x8xf32>
    %c0_44 = arith.constant 0 : index
    %c0_45 = arith.constant 0 : index
    %c0_46 = arith.constant 0 : index
    %c0_47 = arith.constant 0 : index
    %56 = vector.load %arg7[%c0_44, %c0_45, %c0_46, %c0_47] : memref<1x8x8x8xf32, #tpu.memory_space<vmem>>, vector<1x8x8x8xf32>
    %57 = vector.shape_cast %56 : vector<1x8x8x8xf32> to vector<8x8x8xf32>
    %58 = vector.shape_cast %55 : vector<8x8x8xf32> to vector<1x8x8x8xf32>
    tpu.vector_store %arg7[%c0_44, %c0_45, %c0_46, %c0_47], %58 {strides = array<i32>} : memref<1x8x8x8xf32, #tpu.memory_space<vmem>>, vector<1x8x8x8xf32>,
    return
  }
  func.func @transform_0(%arg0: i32, %arg1: i32, %arg2: i32) -> (i32, i32, i32, i32, i32) {
    %c0_i32 = arith.constant 0 : i32
    %c0_i32_0 = arith.constant 0 : i32
    %c0_i32_1 = arith.constant 0 : i32
    %c0_i32_2 = arith.constant 0 : i32
    return %arg0, %c0_i32, %c0_i32_0, %arg1, %c0_i32_1 : i32, i32, i32, i32, i32
  }
  func.func @transform_1(%arg0: i32, %arg1: i32, %arg2: i32) -> (i32, i32, i32) {
    %c0_i32 = arith.constant 0 : i32
    %c0_i32_0 = arith.constant 0 : i32
    %c0_i32_1 = arith.constant 0 : i32
    return %c0_i32, %c0_i32_0, %arg2 : i32, i32, i32
  }
  func.func @transform_2(%arg0: i32, %arg1: i32, %arg2: i32) -> (i32, i32) {
    %c0_i32 = arith.constant 0 : i32
    %c0_i32_0 = arith.constant 0 : i32
    return %c0_i32, %arg2 : i32, i32
  }
  func.func @transform_3(%arg0: i32, %arg1: i32, %arg2: i32) -> (i32, i32) {
    %c0_i32 = arith.constant 0 : i32
    %c0_i32_0 = arith.constant 0 : i32
    return %c0_i32, %arg2 : i32, i32
  }
  func.func @transform_4(%arg0: i32, %arg1: i32, %arg2: i32) -> (i32, i32, i32, i32) {
    %c0_i32 = arith.constant 0 : i32
    %c0_i32_0 = arith.constant 0 : i32
    return %arg0, %c0_i32, %arg1, %arg2 : i32, i32, i32, i32
  }
}

</mosaic_0001>

<bundles_post_ra>
// kernel: tpu_custom_call.1
= control target key start
LH: loop header
LB: loop body
LE: loop exit
PB: predicated region body
PF: predicated region fallthrough
CT: control target
= control target key end

     0   :  { %9 = vsyncpa [#allocation3], 0  ;;  %s1647_s0 = inlined_call_operand.hbm [shape: bf16[2,2,10,8,16], index: 0, kind: input, shape index: {}]   ;;  %s1648_s1 = inlined_call_operand.vmem [shape: bf16[4,16,8], index: 1, kind: input, shape index: {}]   ;;  %s1649_s2 = inlined_call_operand.vmem [shape: f32[1,8], index: 2, kind: input, shape index: {}]   ;;  %s1650_s3 = inlined_call_operand.vmem [shape: f32[1,8], index: 3, kind: input, shape index: {}]   ;;  %s1651_s4 = inlined_call_operand.hbm [shape: f32[2,8,8,8], index: 4, kind: output, shape index: {}]  }
   0x1   :  { %11 = vsyncpa [#allocation3 + $0x1], 0 }
   0x2   :  { %12 = vsyncpa [#allocation4], 0 }
   0x3   :  { %14 = vsyncpa [#allocation4 + $0x1], 0  ;;  %s1410_s15 = smov 0   ;;  %s1412_s16 = smov 0  }
   0x4   :  { %s1414_s17 = smov 0   ;;  %s1416_s18 = smov 0  }
   0x5   :  { %s1418_s19 = smov 0   ;;  %s1420_s20 = smov 0  }
   0x6 LB: > { %s1044_s21 = sadd.s32 4294967295, %s1377_s20   ;;  %s1045_s22 = sadd.s32 4294967294, %s1377_s20   ;;  %s1377_s20 = sphi %s1420_s20, %s20_s20   ;;  %s1373_s19 = sphi %s1418_s19, %s1662_s19   ;;  %s1369_s18 = sphi %s1416_s18, %s1661_s18   ;;  %s1365_s17 = sphi %s1414_s17, %s1660_s17   ;;  %s1361_s16 = sphi %s1412_s16, %s1659_s16   ;;  %s1357_s15 = sphi %s1410_s15, %s1658_s15  }
   0x7   : > { %s39_s23 = sadd.s32 1, %s1373_s19  ;;  %s48_s24 = sadd.s32 1, %s1365_s17 }
   0x8   : > { %p41_p0 = scmp.ge.s32.totalorder %s39_s23, 2  ;;  %p55_p1 = scmp.ne.s32.totalorder %s1365_s17, %s1361_s16 }
   0x9   : > { %p56_p2 = scmp.eq.s32.totalorder %s1377_s20, 0  ;;  %p61_p3 = scmp.ne.s32.totalorder %s1361_s16, %s1357_s15 }
   0xa   : > { %s1664_s23 = smov (%p41_p0, %s39_s23), 0  ;;  %p62_p5 = scmp.eq.s32.totalorder %s1044_s21, 0 }
   0xb   : > { %p1451_p4 = por %p56_p2, %p55_p1  ;;  %s43_s26 = ssub.s32 %s1373_s19, %s1664_s23 }
   0xc   : > { %p167_p6 = scmp.eq.s32.totalorder %s1044_s21, 1  ;;  %p46_p7 = scmp.eq.s32.totalorder %s43_s26, 0 }
   0xd   : > { %p1457_p8 = por %p62_p5, %p61_p3  ;;  %p173_p10 = scmp.eq.s32.totalorder %s1045_s22, 1 }
   0xe   : > { %p1461_p9 = por %p167_p6, %p55_p1  ;;  %p1211_p13 = scmp.lt.s32.totalorder %s1377_s20, 2 }
   0xf   : > { %s1466_s29 = scalar_select %p46_p7, %s1365_s17, %s48_s24  }
  0x10   : > { %p1468_p11 = por %p173_p10, %p61_p3  ;;  %s212_s5 = sand.u32 1, %s1365_s17  }
  0x11   : > { %s1196_s6 = smul.u32 80, %s212_s5  ;;  %p1478_p0 = pnand %p1211_p13, %p1451_p4 }
  0x12   : > { %s1197_s7 = smul.u32 1280, %s1373_s19  ;;  %p1052_p1 = scmp.ge.s32.totalorder %s1377_s20, 1 }
  0x13   : > { %s216_s12 = scalar_lea.vmem [#allocation2], %s1196_s6  ;;  %s213_s14 = scalar_lea.sflag [#allocation3], %s212_s5 }
  0x14   : > { %s223_s11 = scalar_lea.hbm %s1647_s0, %s1197_s7  ;;  %s224_s13 = sshll.u32 %s216_s12, 4  ;;  %s225_s13 = int_to_ptr.vmem [resolvable:$true] %s224_s13 }
  0x15   : > { %p1271_p2 = pneg %p1478_p0  ;;  %s1282_s21 = scalar_lea.vmem %s225_s13, 1280 }
  0x16   : > { %p1283_p3 = scmp.ne.s32.totalorder %s225_s13, %s1282_s21  ;;  %s1379_s22 = smov [#allocation2]  }
  0x17   : > { %s1287_s24 = sshll.u32 %s1379_s22, 4  ;;  %s1288_s24 = int_to_ptr.vmem [resolvable:$false] %s1287_s24 }
  0x18   : > { %p1285_p5 = pnand %p1283_p3, %p1271_p2  ;;  %s1289_s25 = scalar_lea.vmem %s1288_s24, 2560 }
  0x19   : > { %p1290_p4 = scmp.lt.s32.totalorder %s225_s13, %s1288_s24  ;;  %p1291_p7 = scmp.lt.s32.totalorder %s1289_s25, %s1282_s21 }
  0x1a   : > { %p1286_p6 = pneg %p1285_p5 }
  0x1b   : > { %p1292_p10 = por %p1291_p7, %p1290_p4 }
  0x1d   : > { %p1293_p13 = pnand %p1292_p10, %p1286_p6 }
  0x1f   : > { %1296 = shalt.err (!%p1293_p13)
}
  0x20   : > { %s1380_s26 = smov 64   ;;  %s1381_s5 = smov 4  }
  0x21   : > { %1206 = dma.hbm_to_vmem [thread:$0]  (!%p1478_p0), %s223_s11, 1280, %s225_s13, %s213_s14, %s1380_s26, %s1380_s26, %s1381_s5  }
  0x22   : > { %p232_p12 = scmp.lt.s32.totalorder %s1377_s20, 3 }
  0x24   : > { %p233_p2 = pnand %p1052_p1, %p232_p12 }
  0x25   : > { %s1494_s6 = sand.u32 (!%p233_p2), 1, %s1361_s16  }
  0x26   : > { %236 = sbr.rel (%p233_p2) target bundleno = 301 (0x12d), region = 36  ;;  %s239_s9 = scalar_lea.sflag (!%p233_p2), [#allocation3], %s1494_s6 }
  0x27   : > { %s1198_s7 = smul.u32 (!%p233_p2), 80, %s1494_s6 }
  0x29   : > { %s1498_s10 = scalar_lea.vmem (!%p233_p2), [#allocation2], %s1198_s7 }
  0x2b   : > { %1348 = dma.done.wait (%p1457_p8), %s239_s9, 1280  }
  0x2c   : > { %1350 = vsyncadd (%p1457_p8), %s239_s9, 4294966016  ;;  %v1265_v0 = vld [vmem:[%s1648_s1 + $0x8] sm:$0xff]   ;;  %v1266_v1 = vld [vmem:[%s1648_s1] sm:$0xff]   ;;  %vm386_vm0 = vcmask 130048   ;;  %s1053_s26 = sshll.u32 %s1494_s6, 6  ;;  %s1382_s14 = smov [#allocation5]  }
  0x2d   : > { %1156 = vmatprep.subr.bf16.mxu0 %v1265_v0  ;;  %v1062_v2 = vld [vmem:[%s1498_s10 + $0x4] sm:$0xf]  ;;  %v1063_v3 = vld [vmem:[%s1498_s10 + $0x8] sm:$0xf]  ;;  %1166 = vmatprep.subr.bf16.mxu1 %v1266_v1  ;;  %v1055_v7 = vld [vmem:[%s1498_s10 + $0x2c] sm:$0xf] }
  0x2e   : > { %v1054_v4 = vld [vmem:[%s1498_s10 + $0x28] sm:$0xf]  ;;  %1157 = vmatpush3.bf16.msra.mxu0 %v1265_v0  ;;  %vm333_vm1 = vcmp.gt.bf16.partialorder %v1062_v2, 0  ;;  %vm334_vm2 = vcmp.gt.bf16.partialorder %v1063_v3, 0  ;;  %v341_v5 = vmul.bf16 1045249613, %v1062_v2  ;;  %1167 = vmatpush3.bf16.msra.mxu1 %v1266_v1 }
  0x2f   : > { %v342_v6 = vmul.bf16 1045249613, %v1063_v3  ;;  %vm298_vm3 = vcmp.gt.bf16.partialorder %v1054_v4, 0  ;;  %v306_v8 = vmul.bf16 1045249613, %v1054_v4  ;;  %v1267_v9 = vld [vmem:[%s1648_s1 + $0x10] sm:$0xff]  }
  0x30   : > { %v349_v10 = vsel %vm333_vm1, %v1062_v2, %v341_v5  ;;  %vm299_vm4 = vcmp.gt.bf16.partialorder %v1055_v7, 0  ;;  %v307_v12 = vmul.bf16 1045249613, %v1055_v7  ;;  %v1064_v13 = vld [vmem:[%s1498_s10 + $0xc] sm:$0xf]  ;;  %1176 = vmatprep.subr.bf16.mxu0 %v1267_v9  ;;  %s1574_s9 = scalar_lea.vmem [#allocation5], %s1053_s26 }
  0x31   : > { %v350_v11 = vsel %vm334_vm2, %v1063_v3, %v342_v6  ;;  %v1268_v14 = vld [vmem:[%s1648_s1 + $0x18] sm:$0xff]   ;;  %v314_v16 = vsel %vm298_vm3, %v1054_v4, %v306_v8  ;;  %v1065_v17 = vld [vmem:[%s1498_s10 + $0x10] sm:$0xf]  ;;  %vm335_vm5 = vcmp.gt.bf16.partialorder %v1064_v13, 0  ;;  %v343_v18 = vmul.bf16 1045249613, %v1064_v13 }
  0x32   : > { %v1072_v15 = vcombine.low %v349_v10, %v350_v11  ;;  %v315_v19 = vsel %vm299_vm4, %v1055_v7, %v307_v12  ;;  %vm336_vm6 = vcmp.gt.bf16.partialorder %v1065_v17, 0  ;;  %v344_v20 = vmul.bf16 1045249613, %v1065_v17  ;;  %v1056_v21 = vld [vmem:[%s1498_s10 + $0x30] sm:$0xf]  ;;  %1186 = vmatprep.subr.bf16.mxu1 %v1268_v14  ;;  %s916_s8 = sshll.u32 %s1574_s9, 4  ;;  %s1595_s8 = int_to_ptr.vmem [resolvable:$true] %s916_s8 }
  0x33   : > { %v1081_v22 = vcombine.low %v314_v16, %v315_v19  ;;  %v351_v23 = vsel %vm335_vm5, %v1064_v13, %v343_v18  ;;  %v1057_v24 = vld [vmem:[%s1498_s10 + $0x34] sm:$0xf]  ;;  %vm300_vm7 = vcmp.gt.bf16.partialorder %v1056_v21, 0  ;;  %v308_v25 = vmul.bf16 1045249613, %v1056_v21  ;;  %s1297_s27 = scalar_lea.vmem %s1595_s8, 1024 }
  0x34   : > { %1158 = vmatprep.mubr.msk.bf16.mxu0 %vm386_vm0, %v1072_v15  ;;  %v352_v26 = vsel %vm336_vm6, %v1065_v17, %v344_v20  ;;  %vm301_vm8 = vcmp.gt.bf16.partialorder %v1057_v24, 0  ;;  %v309_v27 = vmul.bf16 1045249613, %v1057_v24  ;;  %v1066_v31 = vld [vmem:[%s1498_s10 + $0x14] sm:$0xf]  ;;  %p1298_p8 = scmp.ne.s32.totalorder %s1595_s8, %s1297_s27  ;;  %s1301_s21 = sshll.u32 %s1382_s14, 4  ;;  %s1302_s21 = int_to_ptr.vmem [resolvable:$false] %s1301_s21 }
  0x35   : > { %1168 = vmatprep.mubr.msk.bf16.mxu1 %vm386_vm0, %v1081_v22  ;;  %v1073_v28 = vcombine.low %v351_v23, %v352_v26  ;;  %v316_v29 = vsel %vm300_vm7, %v1056_v21, %v308_v25  ;;  %v1067_v32 = vld [vmem:[%s1498_s10 + $0x18] sm:$0xf]  ;;  %vm337_vm9 = vcmp.gt.bf16.partialorder %v1066_v31, 0  ;;  %v345_v35 = vmul.bf16 1045249613, %v1066_v31  ;;  %s1303_s22 = scalar_lea.vmem %s1302_s21, 2048  ;;  %p1304_p1 = scmp.lt.s32.totalorder %s1595_s8, %s1302_s21 }
  0x36   : > { %v317_v30 = vsel %vm301_vm8, %v1057_v24, %v309_v27  ;;  %v1058_v33 = vld [vmem:[%s1498_s10 + $0x38] sm:$0xf]  ;;  %vm338_vm10 = vcmp.gt.bf16.partialorder %v1067_v32, 0  ;;  %v1059_v36 = vld [vmem:[%s1498_s10 + $0x3c] sm:$0xf]  ;;  %p1299_p12 = pnand %p1298_p8, %p1461_p9  ;;  %p1305_p3 = scmp.lt.s32.totalorder %s1303_s22, %s1297_s27 }
  0x37   : > { %1159 = vmatmul.mubr.msk.bf16.vlgmr.msra.gmra.mxu0 %vm386_vm0, %v1073_v28  ;;  %v1082_v34 = vcombine.low %v316_v29, %v317_v30  ;;  %v346_v37 = vmul.bf16 1045249613, %v1067_v32  ;;  %vm302_vm11 = vcmp.gt.bf16.partialorder %v1058_v33, 0  ;;  %vm303_vm12 = vcmp.gt.bf16.partialorder %v1059_v36, 0  ;;  %v1068_v41 = vld [vmem:[%s1498_s10 + $0x1c] sm:$0xf] }
  0x38   : > { %1177 = vmatpush3.bf16.msra.mxu0 %v1267_v9  ;;  %v310_v38 = vmul.bf16 1045249613, %v1058_v33  ;;  %v353_v39 = vsel %vm337_vm9, %v1066_v31, %v345_v35  ;;  %v311_v40 = vmul.bf16 1045249613, %v1059_v36  ;;  %v1069_v42 = vld [vmem:[%s1498_s10 + $0x20] sm:$0xf]  ;;  %p1300_p0 = pneg %p1299_p12  ;;  %p1306_p5 = por %p1305_p3, %p1304_p1 }
  0x39   : > { %1169 = vmatmul.mubr.msk.bf16.vlgmr.msra.gmra.mxu1 %vm386_vm0, %v1082_v34  ;;  %v354_v43 = vsel %vm338_vm10, %v1067_v32, %v346_v37  ;;  %vm339_vm13 = vcmp.gt.bf16.partialorder %v1068_v41, 0  ;;  %vm340_vm14 = vcmp.gt.bf16.partialorder %v1069_v42, 0  ;;  %v1060_v45 = vld [vmem:[%s1498_s10 + $0x40] sm:$0xf]  ;;  %v1061_v46 = vld [vmem:[%s1498_s10 + $0x44] sm:$0xf] }
  0x3a   : > { %1187 = vmatpush3.bf16.msra.mxu1 %v1268_v14  ;;  %v318_v44 = vsel %vm302_vm11, %v1058_v33, %v310_v38  ;;  %v1074_v47 = vcombine.low %v353_v39, %v354_v43  ;;  %v319_v48 = vsel %vm303_vm12, %v1059_v36, %v311_v40  ;;  %v347_v49 = vmul.bf16 1045249613, %v1068_v41  ;;  %v1090_v51 = vld [vmem:[%s1498_s10 + $0x2c] sm:$0xf]  ;;  %v1091_v54 = vld [vmem:[%s1498_s10 + $0x30] sm:$0xf]  ;;  %p1307_p6 = pnand %p1306_p5, %p1300_p0 }
  0x3b   : > { %v348_v50 = vmul.bf16 1045249613, %v1069_v42  ;;  %v1083_v52 = vcombine.low %v318_v44, %v319_v48  ;;  %vm304_vm15 = vcmp.gt.bf16.partialorder %v1060_v45, 0  ;;  %vm305_vm1 = vcmp.gt.bf16.partialorder %v1061_v46, 0  ;;  %v1109_v58 = vld [vmem:[%s1498_s10 + $0x8] sm:$0xf] }
  0x3c   : > { %v312_v53 = vmul.bf16 1045249613, %v1060_v45  ;;  %1162 = vmatprep.mubr.msk.bf16.mxu0 %vm386_vm0, %v1074_v47  ;;  %v355_v55 = vsel %vm339_vm13, %v1068_v41, %v347_v49  ;;  %v313_v57 = vmul.bf16 1045249613, %v1061_v46  ;;  %vm576_vm2 = vcmp.gt.bf16.partialorder %v1090_v51, 0 }
  0x3d   : > { %v356_v56 = vsel %vm340_vm14, %v1069_v42, %v348_v50  ;;  %1172 = vmatprep.mubr.msk.bf16.mxu1 %vm386_vm0, %v1083_v52  ;;  %vm577_vm3 = vcmp.gt.bf16.partialorder %v1091_v54, 0  ;;  %v584_v61 = vmul.bf16 1045249613, %v1090_v51  ;;  %v1110_v62 = vld [vmem:[%s1498_s10 + $0xc] sm:$0xf]  ;;  %vm723_vm4 = vcmp.gt.bf16.partialorder %v1109_v58, 0 }
  0x3e   : > { %v1075_v59 = vcombine.low %v355_v55, %v356_v56  ;;  %v320_v60 = vsel %vm304_vm15, %v1060_v45, %v312_v53  ;;  %v321_v63 = vsel %vm305_vm1, %v1061_v46, %v313_v57  ;;  %v585_v0 = vmul.bf16 1045249613, %v1091_v54  ;;  %v1092_v1 = vld [vmem:[%s1498_s10 + $0x34] sm:$0xf]  ;;  %v1093_v6 = vld [vmem:[%s1498_s10 + $0x38] sm:$0xf] }
  0x3f   : > { %vm724_vm5 = vcmp.gt.bf16.partialorder %v1110_v62, 0  ;;  %v1084_v2 = vcombine.low %v320_v60, %v321_v63  ;;  %v592_v3 = vsel %vm576_vm2, %v1090_v51, %v584_v61  ;;  %v731_v4 = vmul.bf16 1045249613, %v1109_v58  ;;  %v1111_v9 = vld [vmem:[%s1498_s10 + $0x10] sm:$0xf] }
  0x40   : > { %1163 = vmatmul.mubr.msk.bf16.gmra.mxu0 %vm386_vm0, %v1075_v59  ;;  %v732_v5 = vmul.bf16 1045249613, %v1110_v62  ;;  %v593_v7 = vsel %vm577_vm3, %v1091_v54, %v585_v0  ;;  %vm578_vm6 = vcmp.gt.bf16.partialorder %v1092_v1, 0  ;;  %vm579_vm7 = vcmp.gt.bf16.partialorder %v1093_v6, 0  ;;  %v1112_v14 = vld [vmem:[%s1498_s10 + $0x14] sm:$0xf] }
  0x41   : > { %v586_v8 = vmul.bf16 1045249613, %v1092_v1  ;;  %1173 = vmatmul.mubr.msk.bf16.gmra.mxu1 %vm386_vm0, %v1084_v2  ;;  %v1100_v10 = vcombine.low %v592_v3, %v593_v7  ;;  %v739_v11 = vsel %vm723_vm4, %v1109_v58, %v731_v4  ;;  %v587_v13 = vmul.bf16 1045249613, %v1093_v6  ;;  %v1094_v15 = vld [vmem:[%s1498_s10 + $0x3c] sm:$0xf] }
  0x42   : > { %v740_v12 = vsel %vm724_vm5, %v1110_v62, %v732_v5  ;;  %vm725_vm8 = vcmp.gt.bf16.partialorder %v1111_v9, 0  ;;  %vm726_vm9 = vcmp.gt.bf16.partialorder %v1112_v14, 0  ;;  %v1095_v18 = vld [vmem:[%s1498_s10 + $0x40] sm:$0xf]  ;;  %v1113_v19 = vld [vmem:[%s1498_s10 + $0x18] sm:$0xf] }
  0x43   : > { %v1119_v16 = vcombine.low %v739_v11, %v740_v12  ;;  %v594_v17 = vsel %vm578_vm6, %v1092_v1, %v586_v8  ;;  %1178 = vmatprep.mubr.msk.bf16.mxu0 %vm386_vm0, %v1100_v10  ;;  %v595_v20 = vsel %vm579_vm7, %v1093_v6, %v587_v13  ;;  %v733_v21 = vmul.bf16 1045249613, %v1111_v9  ;;  %v1114_v28 = vld [vmem:[%s1498_s10 + $0x1c] sm:$0xf]  ;;  %v1096_v33 = vld [vmem:[%s1498_s10 + $0x44] sm:$0xf] }
  0x44   : > { %v734_v22 = vmul.bf16 1045249613, %v1112_v14  ;;  %vm580_vm10 = vcmp.gt.bf16.partialorder %v1094_v15, 0  ;;  %v1101_v23 = vcombine.low %v594_v17, %v595_v20  ;;  %vm581_vm11 = vcmp.gt.bf16.partialorder %v1095_v18, 0  ;;  %v1097_v34 = vld [vmem:[%s1498_s10 + $0x48] sm:$0xf] }
  0x45   : > { %1188 = vmatprep.mubr.msk.bf16.mxu1 %vm386_vm0, %v1119_v16  ;;  %v588_v24 = vmul.bf16 1045249613, %v1094_v15  ;;  %v589_v25 = vmul.bf16 1045249613, %v1095_v18  ;;  %v741_v26 = vsel %vm725_vm8, %v1111_v9, %v733_v21  ;;  %vm727_vm12 = vcmp.gt.bf16.partialorder %v1113_v19, 0 }
  0x46   : > { %v742_v27 = vsel %vm726_vm9, %v1112_v14, %v734_v22  ;;  %v735_v29 = vmul.bf16 1045249613, %v1113_v19  ;;  %vm728_vm13 = vcmp.gt.bf16.partialorder %v1114_v28, 0  ;;  %v736_v36 = vmul.bf16 1045249613, %v1114_v28 }
  0x47   : > { %v1120_v30 = vcombine.low %v741_v26, %v742_v27  ;;  %v596_v31 = vsel %vm580_vm10, %v1094_v15, %v588_v24  ;;  %v597_v32 = vsel %vm581_vm11, %v1095_v18, %v589_v25  ;;  %vm582_vm14 = vcmp.gt.bf16.partialorder %v1096_v33, 0  ;;  %v1115_v38 = vld [vmem:[%s1498_s10 + $0x20] sm:$0xf]  ;;  %v1116_v42 = vld [vmem:[%s1498_s10 + $0x24] sm:$0xf]  ;;  %s1135_s10 = sshll.u32 %s1369_s18, 10 }
  0x48   : > { %1179 = vmatmul.mubr.msk.bf16.vlgmr.msra.gmra.mxu0 %vm386_vm0, %v1101_v23  ;;  %v1102_v35 = vcombine.low %v596_v31, %v597_v32  ;;  %v743_v37 = vsel %vm727_vm12, %v1113_v19, %v735_v29  ;;  %vm583_vm15 = vcmp.gt.bf16.partialorder %v1097_v34, 0  ;;  %v590_v39 = vmul.bf16 1045249613, %v1096_v33  ;;  %v1128_v9 = vld [vmem:[%s1649_s2] ss:$0 sm:$0xff]  ;;  %s1593_s13 = scalar_lea.hbm %s1651_s4, %s1135_s10  ;;  %s901_s18 = scalar_lea.sflag [#allocation4], %s1494_s6 }
  0x49   : > { %v591_v40 = vmul.bf16 1045249613, %v1097_v34  ;;  %vm729_vm1 = vcmp.gt.bf16.partialorder %v1115_v38, 0  ;;  %1189 = vmatmul.mubr.msk.bf16.vlgmr.msra.gmra.mxu1 %vm386_vm0, %v1120_v30  ;;  %v744_v41 = vsel %vm728_vm13, %v1114_v28, %v736_v36  ;;  %v737_v43 = vmul.bf16 1045249613, %v1115_v38 }
  0x4a   : > { %1182 = vmatprep.mubr.msk.bf16.mxu0 %vm386_vm0, %v1102_v35  ;;  %v1121_v44 = vcombine.low %v743_v37, %v744_v41  ;;  %v598_v45 = vsel %vm582_vm14, %v1096_v33, %v590_v39  ;;  %vm730_vm2 = vcmp.gt.bf16.partialorder %v1116_v42, 0  ;;  %v738_v48 = vmul.bf16 1045249613, %v1116_v42  ;;  %v1129_v14 = vld [vmem:[%s1650_s3] ss:$0 sm:$0xff] }
  0x4b   : > { %v599_v46 = vsel %vm583_vm15, %v1097_v34, %v591_v40  ;;  %v745_v49 = vsel %vm729_vm1, %v1115_v38, %v737_v43 }
  0x4c   : > { %v1103_v47 = vcombine.low %v598_v45, %v599_v46  ;;  %1192 = vmatprep.mubr.msk.bf16.mxu1 %vm386_vm0, %v1121_v44  ;;  %v746_v50 = vsel %vm730_vm2, %v1116_v42, %v738_v48 }
  0x4d   : > { %v1122_v51 = vcombine.low %v745_v49, %v746_v50 }
  0x50   : > { %1183 = vmatmul.mubr.msk.bf16.gmra.mxu0 %vm386_vm0, %v1103_v47 }
  0x51   : > { %1193 = vmatmul.mubr.msk.bf16.gmra.mxu1 %vm386_vm0, %v1122_v51  ;;  %vm891_vm0 = vcmask 64512  }
  0xf7   : > { %v1160_v52 = vpop.f32.mrf.mxu0 }
  0xf9   : > { %v1170_v53 = vpop.f32.mrf.mxu1  ;;  %v433_v54 = vpop.f32.mrf.mxu0 }
  0xfa   : > { %v545_v3 = vadd.f32 %v1170_v53, %v1160_v52 }
  0xfb   : > { %v536_v55 = vpop.f32.mrf.mxu1  ;;  %v1161_v56 = vpop.f32.mrf.mxu0 }
  0xfc   : > { %v537_v6 = vadd.f32 %v536_v55, %v433_v54 }
  0xfd   : > { %v1171_v57 = vpop.f32.mrf.mxu1  ;;  %v436_v58 = vpop.f32.mrf.mxu0 }
  0xfe   : > { %v548_v11 = vadd.f32 %v1171_v57, %v1161_v56 }
  0xff   : > { %v539_v59 = vpop.f32.mrf.mxu1 }
 0x100   : > { %v1164_v60 = vpop.f32.mrf.mxu0  ;;  %v540_v17 = vadd.f32 %v539_v59, %v436_v58 }
 0x101   : > { %v1174_v61 = vpop.f32.mrf.mxu1 }
 0x102   : > { %v449_v62 = vpop.f32.mrf.mxu0  ;;  %v561_v21 = vadd.f32 %v1174_v61, %v1164_v60 }
 0x103   : > { %v552_v63 = vpop.f32.mrf.mxu1 }
 0x104   : > { %v1165_v0 = vpop.f32.mrf.mxu0  ;;  %v553_v28 = vadd.f32 %v552_v63, %v449_v62 }
 0x105   : > { %v1175_v1 = vpop.f32.mrf.mxu1 }
 0x106   : > { %v452_v2 = vpop.f32.mrf.mxu0  ;;  %v564_v35 = vadd.f32 %v1175_v1, %v1165_v0 }
 0x107   : > { %v555_v4 = vpop.f32.mrf.mxu1 }
 0x108   : > { %v1180_v5 = vpop.f32.mrf.mxu0  ;;  %v556_v42 = vadd.f32 %v555_v4, %v452_v2 }
 0x109   : > { %v708_v7 = vadd.f32 %v1180_v5, %v545_v3  ;;  %v1190_v8 = vpop.f32.mrf.mxu1 }
 0x10a   : > { %v675_v10 = vpop.f32.mrf.mxu0 }
 0x10b   : > { %v855_v12 = vadd.f32 %v1190_v8, %v708_v7  ;;  %v706_v13 = vadd.f32 %v675_v10, %v537_v6  ;;  %v822_v15 = vpop.f32.mrf.mxu1 }
 0x10c   : > { %v1181_v16 = vpop.f32.mrf.mxu0 }
 0x10d   : > { %v870_v18 = vmul.f32 %v1128_v9, %v855_v12  ;;  %v853_v19 = vadd.f32 %v822_v15, %v706_v13  ;;  %v709_v20 = vadd.f32 %v1181_v16, %v548_v11  ;;  %v1191_v22 = vpop.f32.mrf.mxu1 }
 0x10e   : > { %v678_v23 = vpop.f32.mrf.mxu0 }
 0x10f   : > { %v885_v24 = vadd.f32 %v1129_v14, %v870_v18  ;;  %v868_v25 = vmul.f32 %v1128_v9, %v853_v19  ;;  %v856_v26 = vadd.f32 %v1191_v22, %v709_v20  ;;  %v707_v27 = vadd.f32 %v678_v23, %v540_v17  ;;  %v825_v29 = vpop.f32.mrf.mxu1 }
 0x110   : > { %v1184_v30 = vpop.f32.mrf.mxu0 }
 0x111   : > { %894 = vst.msk [vmem:[%s1574_s9 + $0x10] sm:$0xff] %vm891_vm0, %v885_v24  ;;  %v883_v31 = vadd.f32 %v1129_v14, %v868_v25  ;;  %v871_v32 = vmul.f32 %v1128_v9, %v856_v26  ;;  %v854_v33 = vadd.f32 %v825_v29, %v707_v27  ;;  %v712_v34 = vadd.f32 %v1184_v30, %v561_v21  ;;  %v1194_v36 = vpop.f32.mrf.mxu1 }
 0x112   : > { %v691_v37 = vpop.f32.mrf.mxu0 }
 0x113   : > { %892 = vst.msk [vmem:[%s1574_s9] sm:$0xff] %vm891_vm0, %v883_v31  ;;  %v886_v38 = vadd.f32 %v1129_v14, %v871_v32  ;;  %v869_v39 = vmul.f32 %v1128_v9, %v854_v33  ;;  %v859_v40 = vadd.f32 %v1194_v36, %v712_v34  ;;  %v710_v41 = vadd.f32 %v691_v37, %v553_v28  ;;  %v838_v43 = vpop.f32.mrf.mxu1 }
 0x114   : > { %v1185_v44 = vpop.f32.mrf.mxu0 }
 0x115   : > { %895 = vst.msk [vmem:[%s1574_s9 + $0x18] sm:$0xff] %vm891_vm0, %v886_v38  ;;  %v884_v45 = vadd.f32 %v1129_v14, %v869_v39  ;;  %v874_v46 = vmul.f32 %v1128_v9, %v859_v40  ;;  %v857_v47 = vadd.f32 %v838_v43, %v710_v41  ;;  %v713_v48 = vadd.f32 %v1185_v44, %v564_v35  ;;  %v1195_v49 = vpop.f32.mrf.mxu1 }
 0x116   : > { %v694_v50 = vpop.f32.mrf.mxu0 }
 0x117   : > { %893 = vst.msk [vmem:[%s1574_s9 + $0x8] sm:$0xff] %vm891_vm0, %v884_v45  ;;  %v889_v51 = vadd.f32 %v1129_v14, %v874_v46  ;;  %v872_v52 = vmul.f32 %v1128_v9, %v857_v47  ;;  %v860_v53 = vadd.f32 %v1195_v49, %v713_v48  ;;  %v711_v54 = vadd.f32 %v694_v50, %v556_v42  ;;  %v841_v55 = vpop.f32.mrf.mxu1 }
 0x119   : > { %898 = vst.msk [vmem:[%s1574_s9 + $0x30] sm:$0xff] %vm891_vm0, %v889_v51  ;;  %v887_v56 = vadd.f32 %v1129_v14, %v872_v52  ;;  %v875_v57 = vmul.f32 %v1128_v9, %v860_v53  ;;  %v858_v58 = vadd.f32 %v841_v55, %v711_v54 }
 0x11b   : > { %896 = vst.msk [vmem:[%s1574_s9 + $0x20] sm:$0xff] %vm891_vm0, %v887_v56  ;;  %v890_v59 = vadd.f32 %v1129_v14, %v875_v57  ;;  %v873_v60 = vmul.f32 %v1128_v9, %v858_v58 }
 0x11d   : > { %899 = vst.msk [vmem:[%s1574_s9 + $0x38] sm:$0xff] %vm891_vm0, %v890_v59  ;;  %v888_v61 = vadd.f32 %v1129_v14, %v873_v60 }
 0x11f   : > { %897 = vst.msk [vmem:[%s1574_s9 + $0x28] sm:$0xff] %vm891_vm0, %v888_v61 }
 0x120   : > { %1310 = shalt.err (!%p1307_p6)
}
 0x121   : > { %s1311_s24 = scalar_lea.hbm %s1593_s13, 1024  ;;  %s1315_s5 = scalar_lea.hbm %s1651_s4, 2048 }
 0x122   : > { %p1312_p4 = scmp.ne.s32.totalorder %s1593_s13, %s1311_s24  ;;  %p1316_p13 = scmp.lt.s32.totalorder %s1593_s13, %s1651_s4 }
 0x123   : > { %p1317_p2 = scmp.lt.s32.totalorder %s1315_s5, %s1311_s24 }
 0x124   : > { %p1313_p7 = pnand %p1312_p4, %p1461_p9 }
 0x125   : > { %p1318_p8 = por %p1317_p2, %p1316_p13 }
 0x126   : > { %p1314_p10 = pneg %p1313_p7 }
 0x128   : > { %p1319_p12 = pnand %p1318_p8, %p1314_p10 }
 0x12a   : > { %1322 = shalt.err (!%p1319_p12)
}
 0x12b   : > { %s1383_s10 = smov 128   ;;  %s1384_s11 = smov 8  }
 0x12c   : > { %1201 = dma.vmem_to_hbm [thread:$0]  (%p1461_p9), %s1595_s8, 1024, %s1593_s13, %s901_s18, %s1383_s10, %s1383_s10, %s1384_s11  }
 0x12d PF: > { %s931_s12 = sand.u32 1, %s1357_s15   ;;  %p1657_p0 = scmp.ge.s32.totalorder %s1377_s20, 2 }
 0x12e   : > { %s932_s27 = scalar_lea.sflag [#allocation4], %s931_s12 }
 0x12f   : > { %p1208_p1 = pnand %p1657_p0, %p1468_p11 }
 0x131   : > { %p1209_p3 = pneg %p1208_p1 }
 0x133   : > { %1352 = dma.done.wait (%p1209_p3), %s932_s27, 1024  }
 0x134   : > { %1354 = vsyncadd (%p1209_p3), %s932_s27, 4294966272  ;;  %s20_s20 = sadd.s32 1, %s1377_s20   ;;  %s1658_s15 = smov %s1361_s16 }
 0x135   : > { %p17_p5 = scmp.ge.s32.totalorder %s20_s20, 4   ;;  %s1659_s16 = smov %s1365_s17 }
 0x136   : > { %s1660_s17 = smov %s1466_s29  ;;  %s1661_s18 = smov %s1373_s19 }
 0x137   : > { %s1662_s19 = smov %s1664_s23  ;;  %19 = sbr.rel (!%p17_p5) target bundleno = 6 (0x6), region = 97 }
 0x13c   :  { %937 = vsyncpa [#allocation3], 1 }
 0x13d   :  { %939 = vsyncpa [#allocation3 + $0x1], 1 }
 0x13e   :  { %940 = vsyncpa [#allocation4], 1 }
 0x13f   :  { %942 = vsyncpa [#allocation4 + $0x1], 1 }

</bundles_post_ra>
